<compile_context>
chip_gen: v7x
topology: tpu7x:2x2x1
jax: 0.10.0
libtpu: 0.0.40
codegen_flags: <defaults>
</compile_context>

<pallas_src>
import jax
import jax.numpy as jnp
from jax.experimental import pallas as pl
from jax.experimental.pallas import tpu as pltpu


def _make_mixer_kernel(block_b, t_out, t_in):
    def kernel(x_ref, w_ref, b_ref, o_ref):
        # x_ref: (block_b, T_in, block_c)   w_ref: (T_out, T_in)
        # b_ref: (T_out, 1) f32             o_ref: (block_b, T_out, block_c)
        w = w_ref[...]
        b = b_ref[...]                              # (T_out, 1), f32
        if block_b == 1:
            y = jnp.dot(w, x_ref[0], preferred_element_type=jnp.float32)
            o_ref[0] = (y + b).astype(o_ref.dtype)
        else:
            # One batched MXU contraction; batch dim on both operands keeps the
            # output in natural (b, o, c) order -> no in-kernel transpose.
            wb = jnp.broadcast_to(w[None], (block_b, t_out, t_in))  # once/step
            y = jnp.einsum("boi,bic->boc", wb, x_ref[...],
                           preferred_element_type=jnp.float32)
            o_ref[...] = (y + b[None]).astype(o_ref.dtype)          # bias once
    return kernel


def _vmem_capacity_bytes():
    try:
        cap = getattr(pltpu.get_tpu_info(), "vmem_capacity_bytes", None)
        if cap:
            return int(cap)
    except Exception:
        pass
    return 64 << 20          # conservative (v7x-sized) fallback


def _choose_tiles(B, T_in, T_out, C_pad, x_isz, o_isz, w_isz, vmem_cap):
    """Bytes-based tile sizing for a memory-bound op.

    Fill a large fraction of VMEM with the double-buffered x/out tiles
    (plus f32 intermediates), prefer the whole channel axis in one block,
    and keep the grid splittable across megacore TensorCores.
    """
    headroom = 4 << 20
    # ~90 MiB on 128-MiB chips (v5e/v6e); ~45 MiB on v7x's 64 MiB per-TC VMEM.
    budget = min(int(vmem_cap * 0.7), 96 << 20)
    fixed = 2 * (T_out * T_in * w_isz + T_out * 4)   # double-buffered W + bias
    avail = max(budget - fixed - headroom, 1 << 20)

    def per_b(bc):
        # double-buffered x & out tiles + f32 matmul result + W broadcast copy
        return (bc * (2 * T_in * x_isz + 2 * T_out * o_isz + 4 * T_out)
                + T_out * T_in * w_isz)

    # Prefer the whole (contiguous, lane-dense) channel axis in one block.
    if per_b(C_pad) <= avail:
        block_c = C_pad
    else:
        block_c = 128
        for mult in range(C_pad // 128, 0, -1):
            bc = mult * 128
            if C_pad % bc == 0 and per_b(bc) <= avail:
                block_c = bc
                break

    grid_c = C_pad // block_c
    max_bb = max(1, avail // per_b(block_c))
    # Megacore: if the C axis has a single step, leave >= 2 steps on B.
    bb_cap = B if grid_c >= 2 else max(1, B // 2)
    bb_cap = int(min(bb_cap, max_bb, B))
    block_b = 1
    for cand in range(bb_cap, 0, -1):
        if B % cand == 0:
            block_b = cand
            break
    return block_b, block_c


def mlp_mixer(x, w, bias, *, block_b=None, block_c=None, out_dtype=None):
    """Token-mixing linear: out[b] = W @ x[b] + bias[:, None].

    x: (B, T_in, C); w: (T_out, T_in); bias: (T_out,). Returns (B, T_out, C).
    """
    B, T_in, C = x.shape
    T_out, T_in_w = w.shape
    assert T_in_w == T_in, (T_in_w, T_in)
    out_dtype = x.dtype if out_dtype is None else out_dtype
    bias2d = bias.reshape(T_out, 1).astype(jnp.float32)

    # Lane-dense channel axis: pad ragged C to a multiple of 128 so every
    # output store is an unmasked full-lane vst; slice the pad off afterwards.
    C_pad = max(128, ((C + 127) // 128) * 128)
    if C_pad != C:
        x = jnp.pad(x, ((0, 0), (0, 0), (0, C_pad - C)))

    isz = lambda dt: jnp.dtype(dt).itemsize
    vmem_cap = _vmem_capacity_bytes()
    auto_bb, auto_bc = _choose_tiles(B, T_in, T_out, C_pad,
                                     isz(x.dtype), isz(out_dtype),
                                     isz(w.dtype), vmem_cap)
    block_b = auto_bb if block_b is None else block_b
    block_c = auto_bc if block_c is None else block_c
    assert C_pad % block_c == 0 and B % block_b == 0, (B, C_pad, block_b, block_c)

    grid = (B // block_b, C_pad // block_c)

    # VMEM actually requested: double-buffered x/out/W/bias tiles + f32
    # intermediates + headroom, capped at this generation's physical VMEM.
    x_tile = block_b * T_in * block_c * isz(x.dtype)
    o_tile = block_b * T_out * block_c * isz(out_dtype)
    w_bytes = T_out * T_in * isz(w.dtype) + T_out * 4
    y_tmp = block_b * T_out * block_c * 4 + block_b * T_out * T_in * isz(w.dtype)
    need = 2 * (x_tile + o_tile + w_bytes) + y_tmp + (4 << 20)
    vmem_limit = int(min(max(need, 32 << 20), vmem_cap))

    # TODO(synk): if xprof shows exposed x DMA for strided C windows, sweep
    #             pipeline_mode=pl.Buffered(3) on the x BlockSpec.
    # TODO(synk): for production mixer sizes (T ~ 196-1024), pad T_in/T_out to
    #             bf16 sublane (16) multiples in the wrapper for full vreg packing.
    out = pl.pallas_call(
        _make_mixer_kernel(block_b, T_out, T_in),
        out_shape=jax.ShapeDtypeStruct((B, T_out, C_pad), out_dtype),
        grid_spec=pltpu.PrefetchScalarGridSpec(
            num_scalar_prefetch=0,
            grid=grid,
            in_specs=[
                pl.BlockSpec((block_b, T_in, block_c), lambda bi, ci: (bi, 0, ci)),
                # Constant-index W / bias: DMA'd only once by the auto-pipeline.
                # TODO(synk): for very large W when VMEM-tight (v7x), request
                #             pipeline_mode=pl.Buffered(1) on these two specs.
                pl.BlockSpec((T_out, T_in), lambda bi, ci: (0, 0)),
                pl.BlockSpec((T_out, 1), lambda bi, ci: (0, 0)),
            ],
            out_specs=pl.BlockSpec((block_b, T_out, block_c),
                                   lambda bi, ci: (bi, 0, ci)),
        ),
        compiler_params=pltpu.CompilerParams(
            dimension_semantics=("parallel", "parallel"),
            vmem_limit_bytes=vmem_limit,
        ),
    )(x, w, bias2d)

    if C_pad != C:
        out = out[:, :, :C]
    return out


def reference(x, w, bias):
    return (jnp.einsum("oi,bic->boc", w.astype(jnp.float32),
                       x.astype(jnp.float32))
            + bias.astype(jnp.float32)[None, :, None])


def _run_case(key, B, T_in, T_out, C, dtype, **kw):
    k_x, k_w, k_b = jax.random.split(key, 3)
    # Deterministic init mimicking nn.Linear(num_in_tokens, num_out_tokens).
    bound = 1.0 / jnp.sqrt(jnp.float32(T_in))
    x = jax.random.normal(k_x, (B, T_in, C), dtype=jnp.float32).astype(dtype)
    w = jax.random.uniform(k_w, (T_out, T_in), jnp.float32,
                           minval=-bound, maxval=bound).astype(dtype)
    bias = jax.random.uniform(k_b, (T_out,), jnp.float32,
                              minval=-bound, maxval=bound)

    out = jax.block_until_ready(mlp_mixer(x, w, bias, **kw))
    ref = reference(x, w, bias)
    assert out.shape == (B, T_out, C), (out.shape, (B, T_out, C))
    tol = 2e-2 if dtype == jnp.bfloat16 else 1e-5
    assert jnp.allclose(out.astype(jnp.float32), ref, atol=tol, rtol=tol), \
        f"mismatch vs reference at ({B},{T_in},{T_out},{C},{dtype})"


if __name__ == "__main__":
    key = jax.random.PRNGKey(0)
    k1, k2, k3 = jax.random.split(key, 3)

    # Small shape consistent with the module; ragged C -> padded to 128,
    # block_b=1 path (plain 2-D MXU dot), grid split over B for megacore.
    _run_case(k1, B=2, T_in=8, T_out=16, C=32, dtype=jnp.bfloat16)
    # Lane-dense full-C block, block_b>1 batched-einsum path, grid (2, 1).
    _run_case(k2, B=6, T_in=8, T_out=16, C=384, dtype=jnp.bfloat16)
    # Explicit C-split (multi-step channel axis) + f32 path.
    _run_case(k3, B=4, T_in=8, T_out=16, C=256, dtype=jnp.float32,
              block_b=2, block_c=128)

    print("KERNEL_OK")
</pallas_src>

<mosaic_0001>
module attributes {stable_mosaic.version = 11 : i64} {
  func.func @kernel(%arg0: i32, %arg1: i32, %arg2: memref<1x8x128xbf16, #tpu.memory_space<vmem>>, %arg3: memref<16x8xbf16, #tpu.memory_space<vmem>>, %arg4: memref<16x1xf32, #tpu.memory_space<vmem>>, %arg5: memref<1x16x128xbf16, #tpu.memory_space<vmem>>) attributes {dimension_semantics = [#tpu.dimension_semantics<parallel>, #tpu.dimension_semantics<parallel>], iteration_bounds = array<i64: 2, 1>, scalar_prefetch = 0 : i64, scratch_operands = 0 : i64, tpu.core_type = #tpu.core_type<tc>, window_params = [{transform_indices = @transform_0, window_bounds = array<i64: 1, 8, 128>}, {pipeline_mode = #tpu.pipeline_mode<synchronous>, transform_indices = @transform_1, window_bounds = array<i64: 16, 8>}, {pipeline_mode = #tpu.pipeline_mode<synchronous>, transform_indices = @transform_2, window_bounds = array<i64: 16, 1>}, {transform_indices = @transform_3, window_bounds = array<i64: 1, 16, 128>}]} {
    %c0 = arith.constant 0 : index
    %c0_0 = arith.constant 0 : index
    %0 = vector.load %arg3[%c0, %c0_0] : memref<16x8xbf16, #tpu.memory_space<vmem>>, vector<16x8xbf16>
    %c0_1 = arith.constant 0 : index
    %c0_2 = arith.constant 0 : index
    %1 = vector.load %arg4[%c0_1, %c0_2] : memref<16x1xf32, #tpu.memory_space<vmem>>, vector<16x1xf32>
    %c0_3 = arith.constant 0 : index
    %c0_4 = arith.constant 0 : index
    %c0_5 = arith.constant 0 : index
    %2 = vector.load %arg2[%c0_3, %c0_4, %c0_5] : memref<1x8x128xbf16, #tpu.memory_space<vmem>>, vector<1x8x128xbf16>
    %3 = vector.shape_cast %2 : vector<1x8x128xbf16> to vector<8x128xbf16>
    %cst = arith.constant dense<0.000000e+00> : vector<16x128xf32>
    %4 = tpu.matmul %0, %3, %cst {dimension_numbers = #tpu.dot_dimension_numbers<[1], [0], [0], [1], [0, 0, 1, 1], [], []>} : vector<16x8xbf16>, vector<8x128xbf16>, vector<16x128xf32> -> vector<16x128xf32>
    %5 = vector.broadcast %1 : vector<16x1xf32> to vector<16x128xf32>
    %6 = arith.addf %4, %5 : vector<16x128xf32>
    %7 = arith.truncf %6 : vector<16x128xf32> to vector<16x128xbf16>
    %c0_6 = arith.constant 0 : index
    %c0_7 = arith.constant 0 : index
    %c0_8 = arith.constant 0 : index
    %8 = vector.load %arg5[%c0_6, %c0_7, %c0_8] : memref<1x16x128xbf16, #tpu.memory_space<vmem>>, vector<1x16x128xbf16>
    %9 = vector.shape_cast %8 : vector<1x16x128xbf16> to vector<16x128xbf16>
    %10 = vector.shape_cast %7 : vector<16x128xbf16> to vector<1x16x128xbf16>
    tpu.vector_store %arg5[%c0_6, %c0_7, %c0_8], %10 {strides = array<i32>} : memref<1x16x128xbf16, #tpu.memory_space<vmem>>, vector<1x16x128xbf16>,
    return
  }
  func.func @transform_0(%arg0: i32, %arg1: i32) -> (i32, i32, i32) {
    %c0_i32 = arith.constant 0 : i32
    %c0_i32_0 = arith.constant 0 : i32
    return %arg0, %c0_i32, %arg1 : i32, i32, i32
  }
  func.func @transform_1(%arg0: i32, %arg1: i32) -> (i32, i32) {
    %c0_i32 = arith.constant 0 : i32
    %c0_i32_0 = arith.constant 0 : i32
    %c0_i32_1 = arith.constant 0 : i32
    return %c0_i32, %c0_i32_0 : i32, i32
  }
  func.func @transform_2(%arg0: i32, %arg1: i32) -> (i32, i32) {
    %c0_i32 = arith.constant 0 : i32
    %c0_i32_0 = arith.constant 0 : i32
    %c0_i32_1 = arith.constant 0 : i32
    return %c0_i32, %c0_i32_0 : i32, i32
  }
  func.func @transform_3(%arg0: i32, %arg1: i32) -> (i32, i32, i32) {
    %c0_i32 = arith.constant 0 : i32
    %c0_i32_0 = arith.constant 0 : i32
    return %arg0, %c0_i32, %arg1 : i32, i32, i32
  }
}

</mosaic_0001>

<bundles_post_ra>
// kernel: tpu_custom_call.1
= control target key start
LH: loop header
LB: loop body
LE: loop exit
PB: predicated region body
PF: predicated region fallthrough
CT: control target
= control target key end

     0   :  { %8 = vsyncpa [#allocation3], 0  ;;  %s685_s0 = inlined_call_operand.vmem [shape: bf16[2,8,128], index: 0, kind: input, shape index: {}]   ;;  %s686_s1 = inlined_call_operand.vmem [shape: bf16[16,8], index: 1, kind: input, shape index: {}]   ;;  %s687_s2 = inlined_call_operand.vmem [shape: f32[16,1], index: 2, kind: input, shape index: {}]   ;;  %s688_s3 = inlined_call_operand.hbm [shape: bf16[2,16,128], index: 3, kind: output, shape index: {}]  }
   0x1   :  { %10 = vsyncpa [#allocation3 + $0x1], 0  ;;  %s561_s12 = smov 0   ;;  %s563_s13 = smov 0  }
   0x2   :  { %s565_s14 = smov 0   ;;  %s567_s15 = smov 0  }
   0x3   :  { %s569_s16 = smov 0   ;;  %s571_s17 = smov 0  }
   0x4 LB: > { %s361_s18 = sadd.s32 4294967295, %s533_s17   ;;  %s362_s19 = sadd.s32 4294967294, %s533_s17   ;;  %s533_s17 = sphi %s571_s17, %s16_s17   ;;  %s529_s16 = sphi %s569_s16, %s695_s16   ;;  %s525_s15 = sphi %s567_s15, %s694_s15   ;;  %s521_s14 = sphi %s565_s14, %s693_s14   ;;  %s517_s13 = sphi %s563_s13, %s692_s13   ;;  %s513_s12 = sphi %s561_s12, %s691_s12  }
   0x5   : > { %s28_s20 = sadd.s32 1, %s529_s16  ;;  %s107_s21 = sadd.s32 1, %s521_s14 }
   0x6   : > { %p30_p0 = scmp.ge.s32.totalorder %s28_s20, 2  ;;  %p117_p1 = scmp.ne.s32.totalorder %s521_s14, %s517_s13 }
   0x7   : > { %p118_p2 = scmp.eq.s32.totalorder %s361_s18, 1  ;;  %p123_p3 = scmp.ne.s32.totalorder %s517_s13, %s513_s12 }
   0x8   : > { %s697_s20 = smov (%p30_p0, %s28_s20), 0  ;;  %p124_p5 = scmp.eq.s32.totalorder %s362_s19, 1 }
   0x9   : > { %p601_p4 = por %p118_p2, %p117_p1  ;;  %s102_s23 = ssub.s32 %s529_s16, %s697_s20 }
   0xa   : > { %p365_p6 = scmp.ge.s32.totalorder %s533_s17, 1  ;;  %p105_p7 = scmp.eq.s32.totalorder %s102_s23, 0 }
   0xb   : > { %p608_p8 = por %p124_p5, %p123_p3  ;;  %p158_p9 = scmp.lt.s32.totalorder %s533_s17, 3 }
   0xc   : > { %s614_s25 = scalar_select %p105_p7, %s521_s14, %s107_s21  }
   0xd   : > { %p159_p10 = pnand %p365_p6, %p158_p9 }
   0xe   : > { %p184_p11 = scmp.lt.s32.totalorder (!%p159_p10), %s525_s15, 1  ;;  %v535_v0 = vmov (!%p159_p10), 0.0   ;;  %vm536_vm0 = vmmov (!%p159_p10), 0   ;;  %v194_v1 = vld [vmem:[%s687_s2] sm:$0xff] (!%p159_p10)  ;;  %v537_v2 = vmov (!%p159_p10), 0   ;;  %vm216_vm1 = vcmask (!%p159_p10), 1043456  }
   0xf   : > { %162 = sbr.rel (%p159_p10) target bundleno = 264 (0x108), region = 32  ;;  %387 = vmatprep.subr.bf16.mxu0 (!%p159_p10), %v535_v0  ;;  %389 = vmatprep.mubr.msk.bf16.mxu0 (!%p159_p10), %vm536_vm0, %v535_v0  ;;  %v195_v3 = vld [vmem:[%s687_s2 + $0x8] sm:$0xff] (!%p159_p10)  ;;  %v454_v6 = vld [vmem:[%s686_s1] sm:$0xff] (!%p159_p10)   ;;  %vm212_vm2 = vcmask (!%p159_p10), 64512   ;;  %s181_s10 = sand.u32 (!%p159_p10), 1, %s517_s13  }
  0x10   : > { %453 = vset.pattern.permute.xlu0 (!%p159_p10), %v537_v2  ;;  %s366_s11 = sshll.u32 (!%p159_p10), %s181_s10, 3  ;;  %s379_s21 = sshll.u32 (!%p159_p10), %s525_s15, 7 }
  0x11   : > { %199 = vperm.xlu0 (!%p159_p10), %453, %v194_v1   ;;  %s183_s18 = scalar_lea.vmem (!%p159_p10), [#allocation2], %s366_s11  ;;  %s637_s27 = scalar_lea.hbm (!%p159_p10), %s688_s3, %s379_s21 }
  0x12   : > { %s286_s19 = sshll.u32 (!%p159_p10), %s183_s18, 4  ;;  %s632_s19 = int_to_ptr.vmem [resolvable:$true] %s286_s19 }
  0x15   : > { %204 = vperm.xlu0 (!%p159_p10), %453, %v195_v3  }
  0x16   : > { %s185_s28 = scalar_select %p184_p11, %s525_s15, 1 }
  0x17   : > { %s455_s15 = scalar_lea.vmem %s632_s19, 128 }
  0x18   : > { %s367_s29 = sshll.u32 %s185_s28, 2  ;;  %s639_s28 = scalar_lea.sflag [#allocation3], %s181_s10 }
  0x19   : > { %s190_s7 = scalar_lea.vmem %s685_s0, %s367_s29  ;;  %p456_p12 = scmp.ne.s32.totalorder %s632_s19, %s455_s15 }
  0x1a   : > { %v196_v4 = vld [vmem:[%s190_s7] sm:$0xf]  ;;  %s538_s29 = smov [#allocation2]  }
  0x1b   : > { %v218_v5 = vsel %vm216_vm1, %v196_v4, 0  ;;  %p457_p13 = pnand %p456_p12, %p601_p4  ;;  %s459_s30 = sshll.u32 %s538_s29, 4  ;;  %s460_s30 = int_to_ptr.vmem [resolvable:$false] %s459_s30 }
  0x1c   : > { %388 = vmatpush3.bf16.msra.mxu0 %v218_v5  ;;  %s461_s4 = scalar_lea.vmem %s460_s30, 256  ;;  %p462_p1 = scmp.lt.s32.totalorder %s632_s19, %s460_s30 }
  0x1d   : > { %p458_p0 = pneg %p457_p13  ;;  %p463_p2 = scmp.lt.s32.totalorder %s461_s4, %s455_s15 }
  0x1f   : > { %390 = vmatmul.mubr.msk.bf16.vlgmr.msra.gmra.mrb[0].mxu0 %vm212_vm2, %v454_v6  ;;  %p464_p3 = por %p463_p2, %p462_p1 }
  0x21   : > { %p465_p5 = pnand %p464_p3, %p458_p0 }
  0x90   : > { %v200_v7 = vpop.permute.xlu0 %199 }
  0x94   : > { %v205_v10 = vpop.permute.xlu0 %204 }
  0xf2   : > { %v254_v8 = vpop.f32.mrb[0].mxu0 }
  0xf3   : > { %v391_v9 = vpop.f32.mrb[1].mxu0  ;;  %v255_v12 = vadd.f32 %v254_v8, %v200_v7 }
  0xf4   : > { %v257_v11 = vpop.f32.mrb[2].mxu0 }
  0xf5   : > { %v258_v13 = vadd.f32 %v257_v11, %v205_v10  ;;  %v392_v14 = vpop.f32.mrb[3].mxu0 }
  0xf7   : > { %v383_v15 = vpack.c.bf16 %v258_v13, %v255_v12 }
  0xf9   : > { %384 = vst [vmem:[%s183_s18] sm:$0xff] %v383_v15  }
  0xfa   : > { %468 = shalt.err (!%p465_p5)
}
  0xfb   : > { %s469_s5 = scalar_lea.hbm %s637_s27, 128  ;;  %s473_s8 = scalar_lea.hbm %s688_s3, 256 }
  0xfc   : > { %p470_p6 = scmp.ne.s32.totalorder %s637_s27, %s469_s5  ;;  %p474_p10 = scmp.lt.u32.totalorder %s637_s27, %s688_s3 }
  0xfd   : > { %p475_p11 = scmp.lt.u32.totalorder %s473_s8, %s469_s5  ;;  %p477_p13 = scmp.lt.u32.totalorder %s469_s5, %s637_s27 }
  0xfe   : > { %p471_p7 = pnand %p470_p6, %p601_p4 }
  0xff   : > { %p476_p12 = por %p475_p11, %p474_p10 }
 0x100   : > { %p472_p9 = pneg %p471_p7 }
 0x101   : > { %p478_p0 = por %p477_p13, %p476_p12 }
 0x103   : > { %p479_p1 = pnand %p478_p0, %p472_p9 }
 0x105   : > { %482 = shalt.err (!%p479_p1)
}
 0x106   : > { %s539_s11 = smov 64   ;;  %s540_s18 = smov 4  }
 0x107   : > { %393 = dma.vmem_to_hbm [thread:$0]  (%p601_p4), %s632_s19, 128, %s637_s27, %s639_s28, %s539_s11, %s539_s11, %s540_s18  }
 0x108 PF: > { %p399_p2 = scmp.ge.s32.totalorder %s533_s17, 2  ;;  %s301_s21 = sand.u32 1, %s513_s12  }
 0x109   : > { %s302_s23 = scalar_lea.sflag [#allocation3], %s301_s21 }
 0x10a   : > { %p396_p3 = pnand %p399_p2, %p608_p8 }
 0x10c   : > { %508 = dma.done.wait (!%p396_p3), %s302_s23, 128  }
 0x10d   : > { %510 = vsyncadd (!%p396_p3), %s302_s23, 4294967168  ;;  %s16_s17 = sadd.s32 1, %s533_s17   ;;  %s691_s12 = smov %s517_s13 }
 0x10e   : > { %p13_p5 = scmp.ge.s32.totalorder %s16_s17, 4   ;;  %s692_s13 = smov %s521_s14 }
 0x10f   : > { %s693_s14 = smov %s614_s25  ;;  %s694_s15 = smov %s529_s16 }
 0x110   : > { %s695_s16 = smov %s697_s20  ;;  %15 = sbr.rel (!%p13_p5) target bundleno = 4 (0x4), region = 67 }
 0x117   :  { %307 = vsyncpa [#allocation3], 1 }
 0x118   :  { %309 = vsyncpa [#allocation3 + $0x1], 1 }

</bundles_post_ra>
